<compile_context>
chip_gen: v5e
topology: v5e:2x2
jax: 0.10.0
libtpu: 0.0.40
codegen_flags: <defaults>
</compile_context>

<pallas_src>
import jax
import jax.numpy as jnp
from jax.experimental import pallas as pl
from jax.experimental.pallas import tpu as pltpu


def _round_up(x, m):
    return (x + m - 1) // m * m


def _mlp_kernel(x_ref, w1_ref, b1_ref, w2_ref, b2_ref, w3_ref, b3_ref, o_ref):
    x = x_ref[...]
    # fc1 + relu  (MXU matmul with f32 accumulation, f32 epilogue on the VPU)
    h1 = jnp.dot(x, w1_ref[...], preferred_element_type=jnp.float32) + b1_ref[...]
    h1 = jnp.maximum(h1, 0.0)
    # fc2 + relu (cast back to operand dtype so bf16 mode keeps bf16 MXU operands)
    h2 = jnp.dot(h1.astype(w2_ref.dtype), w2_ref[...],
                 preferred_element_type=jnp.float32) + b2_ref[...]
    h2 = jnp.maximum(h2, 0.0)
    # fc3 (no activation)
    out = jnp.dot(h2.astype(w3_ref.dtype), w3_ref[...],
                  preferred_element_type=jnp.float32) + b3_ref[...]
    o_ref[...] = out.astype(o_ref.dtype)


def _build_specs(tile_b, num_in, hidden, num_out, single_buffer_weights):
    if single_buffer_weights:
        def const(shape):
            # Weights/biases never change across the grid: DMA once, 1x VMEM.
            return pl.BlockSpec(shape, lambda i: (0, 0),
                                pipeline_mode=pl.Buffered(1))
    else:
        def const(shape):
            return pl.BlockSpec(shape, lambda i: (0, 0))

    in_specs = [
        pl.BlockSpec((tile_b, num_in), lambda i: (i, 0)),   # x tile (double-buffered)
        const((num_in, hidden)),                            # w1 (VMEM-resident)
        const((1, hidden)),                                 # b1
        const((hidden, hidden)),                            # w2
        const((1, hidden)),                                 # b2
        const((hidden, num_out)),                           # w3
        const((1, num_out)),                                # b3
    ]
    out_spec = pl.BlockSpec((tile_b, num_out), lambda i: (i, 0))
    return in_specs, out_spec


def two_layer_fc_forward(x, params, *, tile_b=1024, use_bf16_matmul=False):
    """x: (B, num_in); params: dict of pre-transposed (in, out) weights and (1, out) biases."""
    w1, b1, w2, b2, w3, b3 = (params["w1"], params["b1"], params["w2"],
                              params["b2"], params["w3"], params["b3"])
    B, num_in = x.shape
    hidden = w1.shape[1]
    num_out = w3.shape[1]
    out_dtype = x.dtype

    if use_bf16_matmul:
        # bf16 operands, f32 accumulation (biases stay f32, added post-matmul).
        x = x.astype(jnp.bfloat16)
        w1 = w1.astype(jnp.bfloat16)
        w2 = w2.astype(jnp.bfloat16)
        w3 = w3.astype(jnp.bfloat16)

    op_itemsize = jnp.dtype(x.dtype).itemsize
    row_align = 16 if op_itemsize == 2 else 8        # bf16 packs 2 rows / sublane

    # ---- generation-aware VMEM budget ---------------------------------------
    try:
        vmem_cap = int(pltpu.get_tpu_info().vmem_capacity_bytes)
    except Exception:
        vmem_cap = 64 << 20                          # conservative: v7x per-TC VMEM
    vmem_budget = int(vmem_cap * 0.85)               # headroom for Mosaic scratch/sems

    # Resident weights + biases (biases are at most 4 bytes/elem).
    weight_bytes = ((num_in * hidden + hidden * hidden + hidden * num_out) * op_itemsize
                    + (2 * hidden + num_out) * 4)

    # Per-row VMEM cost of a batch tile: double-buffered x/out blocks + live f32 h1/h2.
    bytes_per_row = 2 * (num_in + num_out) * op_itemsize + 2 * hidden * 4
    avail = max(vmem_budget - 2 * weight_bytes - (4 << 20), bytes_per_row * row_align)
    vmem_max_rows = max(row_align, (avail // bytes_per_row) // row_align * row_align)

    # ---- batch tile selection ------------------------------------------------
    b_ceil = _round_up(max(B, 1), row_align)
    tile = min(_round_up(tile_b, row_align), b_ceil, vmem_max_rows)
    # Keep >= 2 batch tiles whenever B allows, so the "parallel" batch axis can
    # shard across both TensorCores on v7x (negligible cost on v5e/v6e).
    if b_ceil >= 2 * row_align:
        tile = min(tile, _round_up(pl.cdiv(b_ceil, 2), row_align))
    tile = max(tile, row_align)
    grid = (pl.cdiv(B, tile),)                       # partial last block handled by Pallas

    io_bytes = 2 * tile * (num_in + num_out) * op_itemsize
    scratch_bytes = 2 * tile * hidden * 4
    vmem_limit = int(min(vmem_budget,
                         max(32 << 20,
                             2 * weight_bytes + io_bytes + scratch_bytes + (8 << 20))))

    flops = 2 * B * (num_in * hidden + hidden * hidden + hidden * num_out)
    bytes_accessed = int(B * (num_in + num_out) * op_itemsize + weight_bytes)
    cost = pl.CostEstimate(flops=flops, transcendentals=0, bytes_accessed=bytes_accessed)

    def call(single_buffer_weights):
        in_specs, out_spec = _build_specs(tile, num_in, hidden, num_out,
                                          single_buffer_weights)
        return pl.pallas_call(
            _mlp_kernel,
            out_shape=jax.ShapeDtypeStruct((B, num_out), out_dtype),
            grid=grid,
            in_specs=in_specs,
            out_specs=out_spec,
            compiler_params=pltpu.CompilerParams(
                dimension_semantics=("parallel",),
                vmem_limit_bytes=vmem_limit,
            ),
            cost_estimate=cost,
        )(x, w1, b1, w2, b2, w3, b3)

    try:
        return call(single_buffer_weights=True)
    except Exception:
        # TODO(synk): pl.Buffered(1) not supported on this jax version; fall back
        # to default double-buffered constant blocks (correctness identical).
        return call(single_buffer_weights=False)


def init_params(key, num_in, num_out, hidden_dim, dtype=jnp.float32):
    """Deterministic init mimicking torch.nn.Linear default U(-1/sqrt(fan_in), +)."""
    ks = jax.random.split(key, 6)

    def uniform(k, shape, fan_in):
        bound = 1.0 / jnp.sqrt(jnp.array(fan_in, dtype=jnp.float32))
        return jax.random.uniform(k, shape, dtype=dtype, minval=-bound, maxval=bound)

    # weights stored as (in, out) == torch weight.T
    return {
        "w1": uniform(ks[0], (num_in, hidden_dim), num_in),
        "b1": uniform(ks[1], (1, hidden_dim), num_in),
        "w2": uniform(ks[2], (hidden_dim, hidden_dim), hidden_dim),
        "b2": uniform(ks[3], (1, hidden_dim), hidden_dim),
        "w3": uniform(ks[4], (hidden_dim, num_out), hidden_dim),
        "b3": uniform(ks[5], (1, num_out), hidden_dim),
    }


def reference_forward(x, params):
    h1 = jnp.maximum(x @ params["w1"] + params["b1"], 0.0)
    h2 = jnp.maximum(h1 @ params["w2"] + params["b2"], 0.0)
    return h2 @ params["w3"] + params["b3"]


if __name__ == "__main__":
    key = jax.random.PRNGKey(0)

    # --- small MADDPG-like shapes (grid = 1) --------------------------------
    k_x, k_p = jax.random.split(key)
    batch, num_in, hidden_dim, num_out = 8, 16, 32, 4
    x = jax.random.normal(k_x, (batch, num_in), dtype=jnp.float32)
    params = init_params(k_p, num_in, num_out, hidden_dim)

    out = jax.block_until_ready(two_layer_fc_forward(x, params))
    ref = reference_forward(x, params)
    assert out.shape == (batch, num_out), out.shape
    assert jnp.allclose(out, ref, atol=1e-5, rtol=1e-5), "mismatch vs JAX reference (small)"

    # --- exercise the multi-tile grid + partial last block path (grid >= 2) --
    k_x2, k_p2 = jax.random.split(jax.random.PRNGKey(1))
    batch2, num_in2, hidden2, num_out2 = 200, 24, 64, 6
    x2 = jax.random.normal(k_x2, (batch2, num_in2), dtype=jnp.float32)
    params2 = init_params(k_p2, num_in2, num_out2, hidden2)

    out2 = jax.block_until_ready(two_layer_fc_forward(x2, params2))
    ref2 = reference_forward(x2, params2)
    assert out2.shape == (batch2, num_out2), out2.shape
    assert jnp.allclose(out2, ref2, atol=1e-4, rtol=1e-4), "mismatch vs JAX reference (gridded)"

    # --- bf16-operand path (v6e/v7x MXU throughput lever), looser tolerance --
    out3 = jax.block_until_ready(
        two_layer_fc_forward(x2, params2, use_bf16_matmul=True))
    assert out3.shape == (batch2, num_out2), out3.shape
    assert jnp.allclose(out3, ref2, atol=1.5e-1, rtol=5e-2), "mismatch vs JAX reference (bf16)"

    print("KERNEL_OK")
</pallas_src>

<mosaic_0001>
module attributes {stable_mosaic.version = 11 : i64} {
  func.func @_mlp_kernel(%arg0: i32, %arg1: memref<8x16xf32, #tpu.memory_space<vmem>>, %arg2: memref<16x32xf32, #tpu.memory_space<vmem>>, %arg3: memref<1x32xf32, #tpu.memory_space<vmem>>, %arg4: memref<32x32xf32, #tpu.memory_space<vmem>>, %arg5: memref<1x32xf32, #tpu.memory_space<vmem>>, %arg6: memref<32x4xf32, #tpu.memory_space<vmem>>, %arg7: memref<1x4xf32, #tpu.memory_space<vmem>>, %arg8: memref<8x4xf32, #tpu.memory_space<vmem>>) attributes {dimension_semantics = [#tpu.dimension_semantics<parallel>], iteration_bounds = array<i64: 1>, scalar_prefetch = 0 : i64, scratch_operands = 0 : i64, tpu.core_type = #tpu.core_type<tc>, window_params = [{transform_indices = @transform_0, window_bounds = array<i64: 8, 16>}, {pipeline_mode = #tpu.pipeline_mode<synchronous>, transform_indices = @transform_1, window_bounds = array<i64: 16, 32>}, {pipeline_mode = #tpu.pipeline_mode<synchronous>, transform_indices = @transform_2, window_bounds = array<i64: 1, 32>}, {pipeline_mode = #tpu.pipeline_mode<synchronous>, transform_indices = @transform_3, window_bounds = array<i64: 32, 32>}, {pipeline_mode = #tpu.pipeline_mode<synchronous>, transform_indices = @transform_4, window_bounds = array<i64: 1, 32>}, {pipeline_mode = #tpu.pipeline_mode<synchronous>, transform_indices = @transform_5, window_bounds = array<i64: 32, 4>}, {pipeline_mode = #tpu.pipeline_mode<synchronous>, transform_indices = @transform_6, window_bounds = array<i64: 1, 4>}, {transform_indices = @transform_7, window_bounds = array<i64: 8, 4>}]} {
    %c0 = arith.constant 0 : index
    %c0_0 = arith.constant 0 : index
    %0 = vector.load %arg1[%c0, %c0_0] : memref<8x16xf32, #tpu.memory_space<vmem>>, vector<8x16xf32>
    %c0_1 = arith.constant 0 : index
    %c0_2 = arith.constant 0 : index
    %1 = vector.load %arg2[%c0_1, %c0_2] : memref<16x32xf32, #tpu.memory_space<vmem>>, vector<16x32xf32>
    %cst = arith.constant dense<0.000000e+00> : vector<8x32xf32>
    %2 = tpu.matmul %0, %1, %cst {dimension_numbers = #tpu.dot_dimension_numbers<[1], [0], [0], [1], [0, 0, 1, 1], [], []>} : vector<8x16xf32>, vector<16x32xf32>, vector<8x32xf32> -> vector<8x32xf32>
    %c0_3 = arith.constant 0 : index
    %c0_4 = arith.constant 0 : index
    %3 = vector.load %arg3[%c0_3, %c0_4] : memref<1x32xf32, #tpu.memory_space<vmem>>, vector<1x32xf32>
    %4 = vector.broadcast %3 : vector<1x32xf32> to vector<8x32xf32>
    %5 = arith.addf %2, %4 : vector<8x32xf32>
    %cst_5 = arith.constant 0.000000e+00 : f32
    %6 = vector.broadcast %cst_5 : f32 to vector<8x32xf32>
    %7 = arith.maximumf %5, %6 : vector<8x32xf32>
    %c0_6 = arith.constant 0 : index
    %c0_7 = arith.constant 0 : index
    %8 = vector.load %arg4[%c0_6, %c0_7] : memref<32x32xf32, #tpu.memory_space<vmem>>, vector<32x32xf32>
    %cst_8 = arith.constant dense<0.000000e+00> : vector<8x32xf32>
    %9 = tpu.matmul %7, %8, %cst_8 {dimension_numbers = #tpu.dot_dimension_numbers<[1], [0], [0], [1], [0, 0, 1, 1], [], []>} : vector<8x32xf32>, vector<32x32xf32>, vector<8x32xf32> -> vector<8x32xf32>
    %c0_9 = arith.constant 0 : index
    %c0_10 = arith.constant 0 : index
    %10 = vector.load %arg5[%c0_9, %c0_10] : memref<1x32xf32, #tpu.memory_space<vmem>>, vector<1x32xf32>
    %11 = vector.broadcast %10 : vector<1x32xf32> to vector<8x32xf32>
    %12 = arith.addf %9, %11 : vector<8x32xf32>
    %cst_11 = arith.constant 0.000000e+00 : f32
    %13 = vector.broadcast %cst_11 : f32 to vector<8x32xf32>
    %14 = arith.maximumf %12, %13 : vector<8x32xf32>
    %c0_12 = arith.constant 0 : index
    %c0_13 = arith.constant 0 : index
    %15 = vector.load %arg6[%c0_12, %c0_13] : memref<32x4xf32, #tpu.memory_space<vmem>>, vector<32x4xf32>
    %cst_14 = arith.constant dense<0.000000e+00> : vector<8x4xf32>
    %16 = tpu.matmul %14, %15, %cst_14 {dimension_numbers = #tpu.dot_dimension_numbers<[1], [0], [0], [1], [0, 0, 1, 1], [], []>} : vector<8x32xf32>, vector<32x4xf32>, vector<8x4xf32> -> vector<8x4xf32>
    %c0_15 = arith.constant 0 : index
    %c0_16 = arith.constant 0 : index
    %17 = vector.load %arg7[%c0_15, %c0_16] : memref<1x4xf32, #tpu.memory_space<vmem>>, vector<1x4xf32>
    %18 = vector.broadcast %17 : vector<1x4xf32> to vector<8x4xf32>
    %19 = arith.addf %16, %18 : vector<8x4xf32>
    %c0_17 = arith.constant 0 : index
    %c0_18 = arith.constant 0 : index
    %20 = vector.load %arg8[%c0_17, %c0_18] : memref<8x4xf32, #tpu.memory_space<vmem>>, vector<8x4xf32>
    tpu.vector_store %arg8[%c0_17, %c0_18], %19 {strides = array<i32>} : memref<8x4xf32, #tpu.memory_space<vmem>>, vector<8x4xf32>,
    return
  }
  func.func @transform_0(%arg0: i32) -> (i32, i32) {
    %c0_i32 = arith.constant 0 : i32
    %c0_i32_0 = arith.constant 0 : i32
    return %arg0, %c0_i32 : i32, i32
  }
  func.func @transform_1(%arg0: i32) -> (i32, i32) {
    %c0_i32 = arith.constant 0 : i32
    %c0_i32_0 = arith.constant 0 : i32
    %c0_i32_1 = arith.constant 0 : i32
    return %c0_i32, %c0_i32_0 : i32, i32
  }
  func.func @transform_2(%arg0: i32) -> (i32, i32) {
    %c0_i32 = arith.constant 0 : i32
    %c0_i32_0 = arith.constant 0 : i32
    %c0_i32_1 = arith.constant 0 : i32
    return %c0_i32, %c0_i32_0 : i32, i32
  }
  func.func @transform_3(%arg0: i32) -> (i32, i32) {
    %c0_i32 = arith.constant 0 : i32
    %c0_i32_0 = arith.constant 0 : i32
    %c0_i32_1 = arith.constant 0 : i32
    return %c0_i32, %c0_i32_0 : i32, i32
  }
  func.func @transform_4(%arg0: i32) -> (i32, i32) {
    %c0_i32 = arith.constant 0 : i32
    %c0_i32_0 = arith.constant 0 : i32
    %c0_i32_1 = arith.constant 0 : i32
    return %c0_i32, %c0_i32_0 : i32, i32
  }
  func.func @transform_5(%arg0: i32) -> (i32, i32) {
    %c0_i32 = arith.constant 0 : i32
    %c0_i32_0 = arith.constant 0 : i32
    %c0_i32_1 = arith.constant 0 : i32
    return %c0_i32, %c0_i32_0 : i32, i32
  }
  func.func @transform_6(%arg0: i32) -> (i32, i32) {
    %c0_i32 = arith.constant 0 : i32
    %c0_i32_0 = arith.constant 0 : i32
    %c0_i32_1 = arith.constant 0 : i32
    return %c0_i32, %c0_i32_0 : i32, i32
  }
  func.func @transform_7(%arg0: i32) -> (i32, i32) {
    %c0_i32 = arith.constant 0 : i32
    %c0_i32_0 = arith.constant 0 : i32
    return %arg0, %c0_i32 : i32, i32
  }
}

module attributes {stable_mosaic.version = 11 : i64} {
  func.func @_mlp_kernel(%arg0: i32, %arg1: memref<8x16xf32, #tpu.memory_space<vmem>>, %arg2: memref<16x32xf32, #tpu.memory_space<vmem>>, %arg3: memref<1x32xf32, #tpu.memory_space<vmem>>, %arg4: memref<32x32xf32, #tpu.memory_space<vmem>>, %arg5: memref<1x32xf32, #tpu.memory_space<vmem>>, %arg6: memref<32x4xf32, #tpu.memory_space<vmem>>, %arg7: memref<1x4xf32, #tpu.memory_space<vmem>>, %arg8: memref<8x4xf32, #tpu.memory_space<vmem>>) attributes {dimension_semantics = [#tpu.dimension_semantics<parallel>], iteration_bounds = array<i64: 1>, scalar_prefetch = 0 : i64, scratch_operands = 0 : i64, tpu.core_type = #tpu.core_type<tc>, window_params = [{transform_indices = @transform_0, window_bounds = array<i64: 8, 16>}, {pipeline_mode = #tpu.pipeline_mode<synchronous>, transform_indices = @transform_1, window_bounds = array<i64: 16, 32>}, {pipeline_mode = #tpu.pipeline_mode<synchronous>, transform_indices = @transform_2, window_bounds = array<i64: 1, 32>}, {pipeline_mode = #tpu.pipeline_mode<synchronous>, transform_indices = @transform_3, window_bounds = array<i64: 32, 32>}, {pipeline_mode = #tpu.pipeline_mode<synchronous>, transform_indices = @transform_4, window_bounds = array<i64: 1, 32>}, {pipeline_mode = #tpu.pipeline_mode<synchronous>, transform_indices = @transform_5, window_bounds = array<i64: 32, 4>}, {pipeline_mode = #tpu.pipeline_mode<synchronous>, transform_indices = @transform_6, window_bounds = array<i64: 1, 4>}, {transform_indices = @transform_7, window_bounds = array<i64: 8, 4>}]} {
    %c0 = arith.constant 0 : index
    %c0_0 = arith.constant 0 : index
    %0 = vector.load %arg1[%c0, %c0_0] : memref<8x16xf32, #tpu.memory_space<vmem>>, vector<8x16xf32>
    %c0_1 = arith.constant 0 : index
    %c0_2 = arith.constant 0 : index
    %1 = vector.load %arg2[%c0_1, %c0_2] : memref<16x32xf32, #tpu.memory_space<vmem>>, vector<16x32xf32>
    %cst = arith.constant dense<0.000000e+00> : vector<8x32xf32>
    %2 = tpu.matmul %0, %1, %cst {dimension_numbers = #tpu.dot_dimension_numbers<[1], [0], [0], [1], [0, 0, 1, 1], [], []>} : vector<8x16xf32>, vector<16x32xf32>, vector<8x32xf32> -> vector<8x32xf32>
    %c0_3 = arith.constant 0 : index
    %c0_4 = arith.constant 0 : index
    %3 = vector.load %arg3[%c0_3, %c0_4] : memref<1x32xf32, #tpu.memory_space<vmem>>, vector<1x32xf32>
    %4 = vector.broadcast %3 : vector<1x32xf32> to vector<8x32xf32>
    %5 = arith.addf %2, %4 : vector<8x32xf32>
    %cst_5 = arith.constant 0.000000e+00 : f32
    %6 = vector.broadcast %cst_5 : f32 to vector<8x32xf32>
    %7 = arith.maximumf %5, %6 : vector<8x32xf32>
    %c0_6 = arith.constant 0 : index
    %c0_7 = arith.constant 0 : index
    %8 = vector.load %arg4[%c0_6, %c0_7] : memref<32x32xf32, #tpu.memory_space<vmem>>, vector<32x32xf32>
    %cst_8 = arith.constant dense<0.000000e+00> : vector<8x32xf32>
    %9 = tpu.matmul %7, %8, %cst_8 {dimension_numbers = #tpu.dot_dimension_numbers<[1], [0], [0], [1], [0, 0, 1, 1], [], []>} : vector<8x32xf32>, vector<32x32xf32>, vector<8x32xf32> -> vector<8x32xf32>
    %c0_9 = arith.constant 0 : index
    %c0_10 = arith.constant 0 : index
    %10 = vector.load %arg5[%c0_9, %c0_10] : memref<1x32xf32, #tpu.memory_space<vmem>>, vector<1x32xf32>
    %11 = vector.broadcast %10 : vector<1x32xf32> to vector<8x32xf32>
    %12 = arith.addf %9, %11 : vector<8x32xf32>
    %cst_11 = arith.constant 0.000000e+00 : f32
    %13 = vector.broadcast %cst_11 : f32 to vector<8x32xf32>
    %14 = arith.maximumf %12, %13 : vector<8x32xf32>
    %c0_12 = arith.constant 0 : index
    %c0_13 = arith.constant 0 : index
    %15 = vector.load %arg6[%c0_12, %c0_13] : memref<32x4xf32, #tpu.memory_space<vmem>>, vector<32x4xf32>
    %cst_14 = arith.constant dense<0.000000e+00> : vector<8x4xf32>
    %16 = tpu.matmul %14, %15, %cst_14 {dimension_numbers = #tpu.dot_dimension_numbers<[1], [0], [0], [1], [0, 0, 1, 1], [], []>} : vector<8x32xf32>, vector<32x4xf32>, vector<8x4xf32> -> vector<8x4xf32>
    %c0_15 = arith.constant 0 : index
    %c0_16 = arith.constant 0 : index
    %17 = vector.load %arg7[%c0_15, %c0_16] : memref<1x4xf32, #tpu.memory_space<vmem>>, vector<1x4xf32>
    %18 = vector.broadcast %17 : vector<1x4xf32> to vector<8x4xf32>
    %19 = arith.addf %16, %18 : vector<8x4xf32>
    %c0_17 = arith.constant 0 : index
    %c0_18 = arith.constant 0 : index
    %20 = vector.load %arg8[%c0_17, %c0_18] : memref<8x4xf32, #tpu.memory_space<vmem>>, vector<8x4xf32>
    tpu.vector_store %arg8[%c0_17, %c0_18], %19 {strides = array<i32>} : memref<8x4xf32, #tpu.memory_space<vmem>>, vector<8x4xf32>,
    return
  }
  func.func @transform_0(%arg0: i32) -> (i32, i32) {
    %c0_i32 = arith.constant 0 : i32
    %c0_i32_0 = arith.constant 0 : i32
    return %arg0, %c0_i32 : i32, i32
  }
  func.func @transform_1(%arg0: i32) -> (i32, i32) {
    %c0_i32 = arith.constant 0 : i32
    %c0_i32_0 = arith.constant 0 : i32
    %c0_i32_1 = arith.constant 0 : i32
    return %c0_i32, %c0_i32_0 : i32, i32
  }
  func.func @transform_2(%arg0: i32) -> (i32, i32) {
    %c0_i32 = arith.constant 0 : i32
    %c0_i32_0 = arith.constant 0 : i32
    %c0_i32_1 = arith.constant 0 : i32
    return %c0_i32, %c0_i32_0 : i32, i32
  }
  func.func @transform_3(%arg0: i32) -> (i32, i32) {
    %c0_i32 = arith.constant 0 : i32
    %c0_i32_0 = arith.constant 0 : i32
    %c0_i32_1 = arith.constant 0 : i32
    return %c0_i32, %c0_i32_0 : i32, i32
  }
  func.func @transform_4(%arg0: i32) -> (i32, i32) {
    %c0_i32 = arith.constant 0 : i32
    %c0_i32_0 = arith.constant 0 : i32
    %c0_i32_1 = arith.constant 0 : i32
    return %c0_i32, %c0_i32_0 : i32, i32
  }
  func.func @transform_5(%arg0: i32) -> (i32, i32) {
    %c0_i32 = arith.constant 0 : i32
    %c0_i32_0 = arith.constant 0 : i32
    %c0_i32_1 = arith.constant 0 : i32
    return %c0_i32, %c0_i32_0 : i32, i32
  }
  func.func @transform_6(%arg0: i32) -> (i32, i32) {
    %c0_i32 = arith.constant 0 : i32
    %c0_i32_0 = arith.constant 0 : i32
    %c0_i32_1 = arith.constant 0 : i32
    return %c0_i32, %c0_i32_0 : i32, i32
  }
  func.func @transform_7(%arg0: i32) -> (i32, i32) {
    %c0_i32 = arith.constant 0 : i32
    %c0_i32_0 = arith.constant 0 : i32
    return %arg0, %c0_i32 : i32, i32
  }
}

</mosaic_0001>

<bundles_post_ra>
// kernel: tpu_custom_call.1
= control target key start
LH: loop header
LB: loop body
LE: loop exit
PB: predicated region body
PF: predicated region fallthrough
CT: control target
= control target key end

     0   :  { %12 = vsyncpa [#allocation3], 0  ;;  %s308_s0 = inlined_call_operand.hbm [shape: f32[8,16], index: 0, kind: input, shape index: {}]   ;;  %s309_s1 = inlined_call_operand.hbm [shape: f32[16,32], index: 1, kind: input, shape index: {}]   ;;  %s310_s2 = inlined_call_operand.vmem [shape: f32[1,32], index: 2, kind: input, shape index: {}]   ;;  %s311_s3 = inlined_call_operand.vmem [shape: f32[32,32], index: 3, kind: input, shape index: {}]   ;;  %s312_s4 = inlined_call_operand.vmem [shape: f32[1,32], index: 4, kind: input, shape index: {}]   ;;  %s313_s5 = inlined_call_operand.vmem [shape: f32[32,4], index: 5, kind: input, shape index: {}]   ;;  %s314_s6 = inlined_call_operand.vmem [shape: f32[1,4], index: 6, kind: input, shape index: {}]   ;;  %s315_s7 = inlined_call_operand.vmem [shape: f32[8,4], index: 7, kind: output, shape index: {}]  }
   0x1   :  { %s19_s26 = sshll.u32 %s308_s0, 4  ;;  %s20_s26 = int_to_ptr.hbm [resolvable:$true] %s19_s26 }
   0x2   :  { %13 = vsyncpa [#allocation5], 0  ;;  %s222_s27 = smov [#allocation2]   ;;  %s29_s8 = sshll.u32 %s309_s1, 4  ;;  %s30_s8 = int_to_ptr.hbm [resolvable:$true] %s29_s8 }
   0x3   :  { %s21_s28 = sshll.u32 %s222_s27, 4  ;;  %s223_s9 = smov [#allocation4]   ;;  %s22_s28 = int_to_ptr.vmem [resolvable:$true] %s21_s28 }
   0x4   :  { %24 = dma.hbm_to_vmem [thread:$0]  %s20_s26, 128, %s22_s28, [#allocation3]  }
   0x5   :  { %s31_s10 = sshll.u32 %s223_s9, 4  ;;  %s224_s11 = smov 128   ;;  %s32_s10 = int_to_ptr.vmem [resolvable:$true] %s31_s10 }
   0x6   :  { %s225_s12 = smov 8  }
   0x7   :  { %37 = dma.hbm_to_vmem [thread:$0]  %s30_s8, 256, %s32_s10, [#allocation5], %s224_s11, %s224_s11, %s225_s12  }
   0x8   :  { %218 = dma.done.wait [#allocation3], 128  }
   0x9   :  { %219 = vsyncadd [#allocation3], 4294967168 }
   0xa   :  { %220 = dma.done.wait [#allocation5], 256  }
   0xb   :  { %221 = vsyncadd [#allocation5], 4294967040  ;;  %v58_v0 = vld [vmem:[#allocation4 + $0x8] sm:$0xff]  ;;  %v57_v1 = vld [vmem:[#allocation4] sm:$0xff]  ;;  %vm63_vm0 = vcmask 130048   ;;  %vm96_vm1 = vcmask 261120  }
   0xc   :  { %81 = vmatpush.msra.mxu0 %v58_v0  ;;  %v56_v2 = vld [vmem:[#allocation2] sm:$0xff]  ;;  %v91_v3 = vld [vmem:[%s311_s3 + $0x18] sm:$0xff]  ;;  %v90_v4 = vld [vmem:[%s311_s3 + $0x10] sm:$0xff]  ;;  %vm152_vm2 = vcmask 31744  }
   0xd   :  { %112 = vmatpush.msra.mxu1 %v91_v3  ;;  %v89_v5 = vld [vmem:[%s311_s3 + $0x8] sm:$0xff]  ;;  %v88_v6 = vld [vmem:[%s311_s3] sm:$0xff]  ;;  %v124_v7 = vld [vmem:[%s313_s5 + $0x18] sm:$0xff] }
   0xe   :  { %82 = vmatpush.msra.mxu0 %v57_v1  ;;  %144 = vmatpush.msra.mxu2 %v124_v7  ;;  %v167_v8 = vld [vmem:[%s310_s2] ss:$0 sm:$0xff]  ;;  %v123_v12 = vld [vmem:[%s313_s5 + $0x10] sm:$0xff]  ;;  %v122_v13 = vld [vmem:[%s313_s5 + $0x8] sm:$0xff] }
   0xf   :  { %160 = vmatmul.msk.f32.vlgmr.msra.gmra.mxu0 %vm63_vm0, %v56_v2  ;;  %113 = vmatpush.msra.mxu1 %v90_v4  ;;  %v121_v14 = vld [vmem:[%s313_s5] sm:$0xff] }
  0x10   :  { %145 = vmatpush.msra.mxu2 %v123_v12  ;;  %v168_v15 = vld [vmem:[%s312_s4] ss:$0 sm:$0xff] }
  0x11   :  { %114 = vmatpush.msra.mxu1 %v89_v5  ;;  %v169_v19 = vld [vmem:[%s314_s6] ss:$0 sm:$0xff] }
  0x12   :  { %146 = vmatpush.msra.mxu2 %v122_v13 }
  0x13   :  { %115 = vmatpush.msra.mxu1 %v88_v6 }
  0x14   :  { %147 = vmatpush.msra.mxu2 %v121_v14 }
  0x8c   :  { %v84_v9 = vpop.f32.mrf.mxu0 }
  0x8d   :  { %v85_v10 = vadd.f32 %v167_v8, %v84_v9 }
  0x8f   :  { %v87_v11 = vmax.f32 %v85_v10, 0.0 }
  0x91   :  { %161 = vmatmul.msk.f32.vlgmr.msra.gmra.mxu1 %vm96_vm1, %v87_v11 }
 0x10e   :  { %v117_v16 = vpop.f32.mrf.mxu1 }
 0x10f   :  { %v118_v17 = vadd.f32 %v168_v15, %v117_v16 }
 0x111   :  { %v120_v18 = vmax.f32 %v118_v17, 0.0 }
 0x113   :  { %162 = vmatmul.msk.f32.vlgmr.msra.gmra.mxu2 %vm96_vm1, %v120_v18 }
 0x196   :  { %v149_v20 = vpop.f32.mrf.mxu2 }
 0x197   :  { %v150_v21 = vadd.f32 %v169_v19, %v149_v20 }
 0x199   :  { %153 = vst.msk [vmem:[%s315_s7] sm:$0xff] %vm152_vm2, %v150_v21 }
 0x19a   :  { %158 = vsyncpa [#allocation3], 1 }
 0x19b   :  { %159 = vsyncpa [#allocation5], 1 }

// kernel: tpu_custom_call.1
= control target key start
LH: loop header
LB: loop body
LE: loop exit
PB: predicated region body
PF: predicated region fallthrough
CT: control target
= control target key end

     0   :  { %12 = vsyncpa [#allocation3], 0  ;;  %s308_s0 = inlined_call_operand.hbm [shape: f32[8,16], index: 0, kind: input, shape index: {}]   ;;  %s309_s1 = inlined_call_operand.hbm [shape: f32[16,32], index: 1, kind: input, shape index: {}]   ;;  %s310_s2 = inlined_call_operand.vmem [shape: f32[1,32], index: 2, kind: input, shape index: {}]   ;;  %s311_s3 = inlined_call_operand.vmem [shape: f32[32,32], index: 3, kind: input, shape index: {}]   ;;  %s312_s4 = inlined_call_operand.vmem [shape: f32[1,32], index: 4, kind: input, shape index: {}]   ;;  %s313_s5 = inlined_call_operand.vmem [shape: f32[32,4], index: 5, kind: input, shape index: {}]   ;;  %s314_s6 = inlined_call_operand.vmem [shape: f32[1,4], index: 6, kind: input, shape index: {}]   ;;  %s315_s7 = inlined_call_operand.vmem [shape: f32[8,4], index: 7, kind: output, shape index: {}]  }
   0x1   :  { %s19_s26 = sshll.u32 %s308_s0, 4  ;;  %s20_s26 = int_to_ptr.hbm [resolvable:$true] %s19_s26 }
   0x2   :  { %13 = vsyncpa [#allocation5], 0  ;;  %s222_s27 = smov [#allocation2]   ;;  %s29_s8 = sshll.u32 %s309_s1, 4  ;;  %s30_s8 = int_to_ptr.hbm [resolvable:$true] %s29_s8 }
   0x3   :  { %s21_s28 = sshll.u32 %s222_s27, 4  ;;  %s223_s9 = smov [#allocation4]   ;;  %s22_s28 = int_to_ptr.vmem [resolvable:$true] %s21_s28 }
   0x4   :  { %24 = dma.hbm_to_vmem [thread:$0]  %s20_s26, 128, %s22_s28, [#allocation3]  }
   0x5   :  { %s31_s10 = sshll.u32 %s223_s9, 4  ;;  %s224_s11 = smov 128   ;;  %s32_s10 = int_to_ptr.vmem [resolvable:$true] %s31_s10 }
   0x6   :  { %s225_s12 = smov 8  }
   0x7   :  { %37 = dma.hbm_to_vmem [thread:$0]  %s30_s8, 256, %s32_s10, [#allocation5], %s224_s11, %s224_s11, %s225_s12  }
   0x8   :  { %218 = dma.done.wait [#allocation3], 128  }
   0x9   :  { %219 = vsyncadd [#allocation3], 4294967168 }
   0xa   :  { %220 = dma.done.wait [#allocation5], 256  }
   0xb   :  { %221 = vsyncadd [#allocation5], 4294967040  ;;  %v58_v0 = vld [vmem:[#allocation4 + $0x8] sm:$0xff]  ;;  %v57_v1 = vld [vmem:[#allocation4] sm:$0xff]  ;;  %vm63_vm0 = vcmask 130048   ;;  %vm96_vm1 = vcmask 261120  }
   0xc   :  { %81 = vmatpush.msra.mxu0 %v58_v0  ;;  %v56_v2 = vld [vmem:[#allocation2] sm:$0xff]  ;;  %v91_v3 = vld [vmem:[%s311_s3 + $0x18] sm:$0xff]  ;;  %v90_v4 = vld [vmem:[%s311_s3 + $0x10] sm:$0xff]  ;;  %vm152_vm2 = vcmask 31744  }
   0xd   :  { %112 = vmatpush.msra.mxu1 %v91_v3  ;;  %v89_v5 = vld [vmem:[%s311_s3 + $0x8] sm:$0xff]  ;;  %v88_v6 = vld [vmem:[%s311_s3] sm:$0xff]  ;;  %v124_v7 = vld [vmem:[%s313_s5 + $0x18] sm:$0xff] }
   0xe   :  { %82 = vmatpush.msra.mxu0 %v57_v1  ;;  %144 = vmatpush.msra.mxu2 %v124_v7  ;;  %v167_v8 = vld [vmem:[%s310_s2] ss:$0 sm:$0xff]  ;;  %v123_v12 = vld [vmem:[%s313_s5 + $0x10] sm:$0xff]  ;;  %v122_v13 = vld [vmem:[%s313_s5 + $0x8] sm:$0xff] }
   0xf   :  { %160 = vmatmul.msk.f32.vlgmr.msra.gmra.mxu0 %vm63_vm0, %v56_v2  ;;  %113 = vmatpush.msra.mxu1 %v90_v4  ;;  %v121_v14 = vld [vmem:[%s313_s5] sm:$0xff] }
  0x10   :  { %145 = vmatpush.msra.mxu2 %v123_v12  ;;  %v168_v15 = vld [vmem:[%s312_s4] ss:$0 sm:$0xff] }
  0x11   :  { %114 = vmatpush.msra.mxu1 %v89_v5  ;;  %v169_v19 = vld [vmem:[%s314_s6] ss:$0 sm:$0xff] }
  0x12   :  { %146 = vmatpush.msra.mxu2 %v122_v13 }
  0x13   :  { %115 = vmatpush.msra.mxu1 %v88_v6 }
  0x14   :  { %147 = vmatpush.msra.mxu2 %v121_v14 }
  0x8c   :  { %v84_v9 = vpop.f32.mrf.mxu0 }
  0x8d   :  { %v85_v10 = vadd.f32 %v167_v8, %v84_v9 }
  0x8f   :  { %v87_v11 = vmax.f32 %v85_v10, 0.0 }
  0x91   :  { %161 = vmatmul.msk.f32.vlgmr.msra.gmra.mxu1 %vm96_vm1, %v87_v11 }
 0x10e   :  { %v117_v16 = vpop.f32.mrf.mxu1 }
 0x10f   :  { %v118_v17 = vadd.f32 %v168_v15, %v117_v16 }
 0x111   :  { %v120_v18 = vmax.f32 %v118_v17, 0.0 }
 0x113   :  { %162 = vmatmul.msk.f32.vlgmr.msra.gmra.mxu2 %vm96_vm1, %v120_v18 }
 0x196   :  { %v149_v20 = vpop.f32.mrf.mxu2 }
 0x197   :  { %v150_v21 = vadd.f32 %v169_v19, %v149_v20 }
 0x199   :  { %153 = vst.msk [vmem:[%s315_s7] sm:$0xff] %vm152_vm2, %v150_v21 }
 0x19a   :  { %158 = vsyncpa [#allocation3], 1 }
 0x19b   :  { %159 = vsyncpa [#allocation5], 1 }

</bundles_post_ra>
